<compile_context>
chip_gen: v7x
topology: tpu7x:2x2x1
jax: 0.10.0
libtpu: 0.0.40
codegen_flags: <defaults>
</compile_context>

<pallas_src>
import functools

import jax
import jax.numpy as jnp
import numpy as np
from jax import lax
from jax.experimental import pallas as pl
from jax.experimental.pallas import tpu as pltpu


def _out_size(n, k, stride, padding, dilation):
    return (n + 2 * padding - dilation * (k - 1) - 1) // stride + 1


def _sparse_conv_kernel(x_ref, m_ref, w_ref, b_ref, xo_ref, mo_ref, acc_ref, *,
                        cin_total, cin_tile, n_cin_tiles, k, dilation, w_pad,
                        slab):
    """One (batch sample, cin-tile) grid step.

    x_ref : (cin_tile, Hp*Wp)   pre-masked, zero-padded input (compute dtype)
    m_ref : (1, Hp*Wp)          mask, -inf in spatial padding (f32)
    w_ref : (K*K, Cout, Cin_p)  weights, tap-major (compute dtype, resident)
    b_ref : (Cout, 1)           bias (f32, resident)
    xo_ref: (Cout, slab)        flat output slab; output (oh,ow) lives at
                                column oh*stride*Wp + ow*stride
    mo_ref: (1, slab)           flat max-pooled mask slab
    acc_ref: (Cout, slab) f32   accumulator across cin tiles
    """
    c = pl.program_id(1)

    @pl.when(c == 0)
    def _init():
        acc_ref[...] = jnp.zeros_like(acc_ref)

    # conv = sum over taps of a (Cout, cin_tile) x (cin_tile, slab) matmul on a
    # *shifted window* of the flat padded image -- no im2col materialization.
    psum = None
    for kh in range(k):
        for kw in range(k):
            tap = kh * k + kw
            off = kh * dilation * w_pad + kw * dilation          # static
            x_slab = x_ref[:, pl.ds(off, slab)]                  # (cin_tile, slab)
            if n_cin_tiles == 1:
                w_tap = w_ref[tap]                               # (Cout, cin_tile)
            else:
                c0 = pl.multiple_of(c * cin_tile, cin_tile)
                w_tap = w_ref[tap, :, pl.ds(c0, cin_tile)]
            d = jnp.dot(w_tap, x_slab, preferred_element_type=jnp.float32)
            psum = d if psum is None else psum + d
    acc_ref[...] += psum

    @pl.when(c == n_cin_tiles - 1)
    def _finalize():
        # Normalizer conv(mc, ones) and MaxPool2d(m), fused over the same taps.
        norm = jnp.zeros((1, slab), jnp.float32)
        pool = jnp.full((1, slab), -jnp.inf, jnp.float32)
        for kh in range(k):
            for kw in range(k):
                off = kh * dilation * w_pad + kw * dilation
                m_slab = m_ref[:, pl.ds(off, slab)]              # (1, slab)
                norm = norm + jnp.maximum(m_slab, 0.0)           # -inf pad -> 0
                pool = jnp.maximum(pool, m_slab)                 # -inf pad == torch pool
        norm = jnp.maximum(norm * cin_total, 1e-5)               # clamp(min=1e-5)
        out = acc_ref[...] / norm + b_ref[...]                   # exact division
        xo_ref[...] = out.astype(xo_ref.dtype)
        mo_ref[...] = pool.astype(mo_ref.dtype)


def sparse_conv(x, m, weight, bias=None, *, kernel_size, stride, padding=0,
                dilation=1, compute_dtype=jnp.bfloat16, vmem_limit_bytes=None):
    n, cin, h, w = x.shape
    cout = weight.shape[0]
    k = kernel_size
    oh = _out_size(h, k, stride, padding, dilation)
    ow = _out_size(w, k, stride, padding, dilation)
    h_p, w_p = h + 2 * padding, w + 2 * padding
    hw_p = h_p * w_p
    kk = k * k
    # Flat-slab length: output (oh_, ow_) lives at column oh_*stride*w_p + ow_*stride.
    slab = (oh - 1) * stride * w_p + (ow - 1) * stride + 1

    if bias is None:
        bias = jnp.zeros((cout,), x.dtype)

    # Pre-mask + zero-pad the input ONCE (no K^2 duplication); cast the dominant
    # stream to bf16.  Mask gets -inf padding (exact MaxPool2d semantics) and is
    # clamped back to 0 in-kernel for the normalizer.
    xm = (x * m).astype(compute_dtype)
    xm = jnp.pad(xm, ((0, 0), (0, 0), (padding, padding), (padding, padding)))
    mp = jnp.pad(m.astype(jnp.float32),
                 ((0, 0), (0, 0), (padding, padding), (padding, padding)),
                 constant_values=-jnp.inf)

    # ---- VMEM-aware Cin tiling (per-generation budget) ----------------------
    if vmem_limit_bytes is None:
        try:
            cap = pltpu.get_tpu_info().vmem_capacity_bytes
        except Exception:
            cap = 64 * 1024 * 1024                  # conservative (v7x per-core)
        vmem_limit_bytes = min(int(cap * 3 // 4), 96 * 1024 * 1024)
    xb = jnp.dtype(compute_dtype).itemsize
    ob = jnp.dtype(x.dtype).itemsize
    fixed = (kk * cout * (cin + 8) * xb             # resident weight
             + 2 * hw_p * 4                         # mask block (double-buffered)
             + cout * slab * 4                      # f32 accumulator
             + 2 * cout * slab * ob + 2 * slab * 4  # outputs (double-buffered)
             + cout * 4)
    per_c = 2 * hw_p * xb + 2 * slab * xb           # x block (dbl-buf) + tap temps
    avail = int(vmem_limit_bytes * 0.8) - fixed
    if cin * per_c <= avail or cin <= 8:
        cin_tile = cin                              # whole Cin in one pass
    else:
        cin_tile = int(max(8, min(cin, (avail // per_c) // 8 * 8)))
    n_ct = -(-cin // cin_tile)
    cin_p = n_ct * cin_tile
    if cin_p != cin:
        xm = jnp.pad(xm, ((0, 0), (0, cin_p - cin), (0, 0), (0, 0)))
        weight = jnp.pad(weight, ((0, 0), (0, cin_p - cin), (0, 0), (0, 0)))

    xm = xm.reshape(n, cin_p, hw_p)
    mp = mp.reshape(n, 1, hw_p)
    # weight -> (K*K, Cout, Cin_p): cheap static per-tap 2-D slices in-kernel.
    w_t = jnp.transpose(weight, (2, 3, 0, 1)).reshape(kk, cout, cin_p)
    w_t = w_t.astype(compute_dtype)
    b_col = bias.reshape(cout, 1).astype(jnp.float32)

    kernel = functools.partial(
        _sparse_conv_kernel, cin_total=float(cin), cin_tile=cin_tile,
        n_cin_tiles=n_ct, k=k, dilation=dilation, w_pad=w_p, slab=slab)

    out_flat, pool_flat = pl.pallas_call(
        kernel,
        out_shape=(jax.ShapeDtypeStruct((n, cout, slab), x.dtype),
                   jax.ShapeDtypeStruct((n, 1, slab), m.dtype)),
        grid=(n, n_ct),
        in_specs=[
            pl.BlockSpec((None, cin_tile, hw_p), lambda i, c: (i, c, 0)),  # x slab
            pl.BlockSpec((None, 1, hw_p), lambda i, c: (i, 0, 0)),         # mask
            pl.BlockSpec((kk, cout, cin_p), lambda i, c: (0, 0, 0)),       # weight
            pl.BlockSpec((cout, 1), lambda i, c: (0, 0)),                  # bias
        ],
        out_specs=(
            pl.BlockSpec((None, cout, slab), lambda i, c: (i, 0, 0)),
            pl.BlockSpec((None, 1, slab), lambda i, c: (i, 0, 0)),
        ),
        scratch_shapes=[pltpu.VMEM((cout, slab), jnp.float32)],
        compiler_params=pltpu.CompilerParams(
            dimension_semantics=("parallel", "arbitrary"),
            vmem_limit_bytes=int(vmem_limit_bytes)),
    )(xm, mp, w_t, b_col)

    # De-interleave the flat slabs back to NCHW: reshape + strided slice only
    # (no transpose epilogue).
    def _extract(a, ch):
        a = jnp.pad(a, ((0, 0), (0, 0), (0, oh * stride * w_p - slab)))
        a = a.reshape(n, ch, oh, stride * w_p)
        return a[:, :, :, ::stride][:, :, :, :ow]

    return _extract(out_flat, cout), _extract(pool_flat, 1)


def _ref_forward(x, m, weight, bias, *, kernel_size, stride, padding, dilation):
    """Pure-JAX reference mirroring the PyTorch forward (validation only)."""
    dn = ("NCHW", "OIHW", "NCHW")
    mc = jnp.broadcast_to(m, x.shape)
    xm = x * mc
    conv = lax.conv_general_dilated(
        xm, weight, (stride, stride), [(padding, padding)] * 2,
        rhs_dilation=(dilation, dilation), dimension_numbers=dn,
        precision=lax.Precision.HIGHEST)
    norm = lax.conv_general_dilated(
        mc, jnp.ones_like(weight), (stride, stride), [(padding, padding)] * 2,
        rhs_dilation=(dilation, dilation), dimension_numbers=dn,
        precision=lax.Precision.HIGHEST)
    norm = jnp.maximum(norm, 1e-5)
    xo = conv / norm + bias.reshape(1, -1, 1, 1)
    k = kernel_size
    mo = lax.reduce_window(
        m, -jnp.inf, lax.max,
        window_dimensions=(1, 1, k, k),
        window_strides=(1, 1, stride, stride),
        padding=((0, 0), (0, 0), (padding, padding), (padding, padding)),
        window_dilation=(1, 1, dilation, dilation))
    return xo, mo


if __name__ == "__main__":
    key = jax.random.PRNGKey(0)
    k_x, k_m, k_w = jax.random.split(key, 3)

    N, Cin, Cout, H, W = 2, 4, 8, 16, 16
    K, STRIDE, PAD, DIL = 3, 1, 1, 1

    x = jax.random.normal(k_x, (N, Cin, H, W), jnp.float32)
    m = (jax.random.uniform(k_m, (N, 1, H, W)) > 0.5).astype(jnp.float32)

    # nn.init.kaiming_normal_(weight, mode='fan_out', nonlinearity='relu'):
    #   std = sqrt(2 / fan_out), fan_out = Cout * K * K
    fan_out = Cout * K * K
    weight = jax.random.normal(k_w, (Cout, Cin, K, K), jnp.float32) * jnp.sqrt(2.0 / fan_out)
    bias = jnp.zeros((Cout,), jnp.float32)

    # Main config (bf16 compute, as recommended by the perf review).
    fwd = jax.jit(functools.partial(sparse_conv, kernel_size=K, stride=STRIDE,
                                    padding=PAD, dilation=DIL))
    x_out, m_out = fwd(x, m, weight, bias)
    jax.block_until_ready((x_out, m_out))

    x_ref, m_ref = _ref_forward(x, m, weight, bias, kernel_size=K, stride=STRIDE,
                                padding=PAD, dilation=DIL)
    np.testing.assert_allclose(np.asarray(x_out), np.asarray(x_ref), rtol=1e-2, atol=1e-2)
    np.testing.assert_allclose(np.asarray(m_out), np.asarray(m_ref), rtol=0, atol=0)

    # Strided / unpadded config exercises the generic stride path.
    fwd_s2 = jax.jit(functools.partial(sparse_conv, kernel_size=K, stride=2,
                                       padding=0, dilation=1))
    x_out2, m_out2 = fwd_s2(x, m, weight, bias)
    jax.block_until_ready((x_out2, m_out2))
    x_ref2, m_ref2 = _ref_forward(x, m, weight, bias, kernel_size=K, stride=2,
                                  padding=0, dilation=1)
    np.testing.assert_allclose(np.asarray(x_out2), np.asarray(x_ref2), rtol=1e-2, atol=1e-2)
    np.testing.assert_allclose(np.asarray(m_out2), np.asarray(m_ref2), rtol=0, atol=0)

    print("KERNEL_OK")
</pallas_src>

<mosaic_0001>
module attributes {stable_mosaic.version = 11 : i64} {
  func.func @_sparse_conv_kernel(%arg0: i32, %arg1: i32, %arg2: memref<1x4x324xbf16, #tpu.memory_space<vmem>>, %arg3: memref<1x1x324xf32, #tpu.memory_space<vmem>>, %arg4: memref<9x8x4xbf16, #tpu.memory_space<vmem>>, %arg5: memref<8x1xf32, #tpu.memory_space<vmem>>, %arg6: memref<1x8x286xf32, #tpu.memory_space<vmem>>, %arg7: memref<1x1x286xf32, #tpu.memory_space<vmem>>, %arg8: memref<8x286xf32, #tpu.memory_space<vmem>>) attributes {dimension_semantics = [#tpu.dimension_semantics<parallel>, #tpu.dimension_semantics<arbitrary>], iteration_bounds = array<i64: 2, 1>, scalar_prefetch = 0 : i64, scratch_operands = 1 : i64, tpu.core_type = #tpu.core_type<tc>, window_params = [{transform_indices = @transform_0, window_bounds = array<i64: 1, 4, 324>}, {transform_indices = @transform_1, window_bounds = array<i64: 1, 1, 324>}, {pipeline_mode = #tpu.pipeline_mode<synchronous>, transform_indices = @transform_2, window_bounds = array<i64: 9, 8, 4>}, {pipeline_mode = #tpu.pipeline_mode<synchronous>, transform_indices = @transform_3, window_bounds = array<i64: 8, 1>}, {transform_indices = @transform_4, window_bounds = array<i64: 1, 8, 286>}, {transform_indices = @transform_5, window_bounds = array<i64: 1, 1, 286>}]} {
    %c0_i32 = arith.constant 0 : i32
    %0 = arith.cmpi eq, %arg1, %c0_i32 : i32
    %1 = arith.extui %0 : i1 to i32
    %c0_i32_0 = arith.constant 0 : i32
    %2 = arith.cmpi ne, %1, %c0_i32_0 : i32
    scf.if %2 {
      %cst_54 = arith.constant 0.000000e+00 : f32
      %62 = vector.broadcast %cst_54 : f32 to vector<8x286xf32>
      %c0_55 = arith.constant 0 : index
      %c0_56 = arith.constant 0 : index
      %63 = vector.load %arg8[%c0_55, %c0_56] : memref<8x286xf32, #tpu.memory_space<vmem>>, vector<8x286xf32>
      tpu.vector_store %arg8[%c0_55, %c0_56], %62 {strides = array<i32>} : memref<8x286xf32, #tpu.memory_space<vmem>>, vector<8x286xf32>,
    } else {
    }
    %c0 = arith.constant 0 : index
    %c0_1 = arith.constant 0 : index
    %c0_2 = arith.constant 0 : index
    %3 = vector.load %arg2[%c0, %c0_1, %c0_2] : memref<1x4x324xbf16, #tpu.memory_space<vmem>>, vector<1x4x286xbf16>
    %4 = vector.shape_cast %3 : vector<1x4x286xbf16> to vector<4x286xbf16>
    %c0_3 = arith.constant 0 : index
    %c0_4 = arith.constant 0 : index
    %c0_5 = arith.constant 0 : index
    %5 = vector.load %arg4[%c0_3, %c0_4, %c0_5] : memref<9x8x4xbf16, #tpu.memory_space<vmem>>, vector<1x8x4xbf16>
    %6 = vector.shape_cast %5 : vector<1x8x4xbf16> to vector<8x4xbf16>
    %cst = arith.constant dense<0.000000e+00> : vector<8x286xf32>
    %7 = tpu.matmul %6, %4, %cst {dimension_numbers = #tpu.dot_dimension_numbers<[1], [0], [0], [1], [0, 0, 1, 1], [], []>} : vector<8x4xbf16>, vector<4x286xbf16>, vector<8x286xf32> -> vector<8x286xf32>
    %c0_6 = arith.constant 0 : index
    %c0_7 = arith.constant 0 : index
    %c1 = arith.constant 1 : index
    %8 = vector.load %arg2[%c0_6, %c0_7, %c1] : memref<1x4x324xbf16, #tpu.memory_space<vmem>>, vector<1x4x286xbf16>
    %9 = vector.shape_cast %8 : vector<1x4x286xbf16> to vector<4x286xbf16>
    %c1_8 = arith.constant 1 : index
    %c0_9 = arith.constant 0 : index
    %c0_10 = arith.constant 0 : index
    %10 = vector.load %arg4[%c1_8, %c0_9, %c0_10] : memref<9x8x4xbf16, #tpu.memory_space<vmem>>, vector<1x8x4xbf16>
    %11 = vector.shape_cast %10 : vector<1x8x4xbf16> to vector<8x4xbf16>
    %cst_11 = arith.constant dense<0.000000e+00> : vector<8x286xf32>
    %12 = tpu.matmul %11, %9, %cst_11 {dimension_numbers = #tpu.dot_dimension_numbers<[1], [0], [0], [1], [0, 0, 1, 1], [], []>} : vector<8x4xbf16>, vector<4x286xbf16>, vector<8x286xf32> -> vector<8x286xf32>
    %13 = arith.addf %7, %12 : vector<8x286xf32>
    %c0_12 = arith.constant 0 : index
    %c0_13 = arith.constant 0 : index
    %c2 = arith.constant 2 : index
    %14 = vector.load %arg2[%c0_12, %c0_13, %c2] : memref<1x4x324xbf16, #tpu.memory_space<vmem>>, vector<1x4x286xbf16>
    %15 = vector.shape_cast %14 : vector<1x4x286xbf16> to vector<4x286xbf16>
    %c2_14 = arith.constant 2 : index
    %c0_15 = arith.constant 0 : index
    %c0_16 = arith.constant 0 : index
    %16 = vector.load %arg4[%c2_14, %c0_15, %c0_16] : memref<9x8x4xbf16, #tpu.memory_space<vmem>>, vector<1x8x4xbf16>
    %17 = vector.shape_cast %16 : vector<1x8x4xbf16> to vector<8x4xbf16>
    %cst_17 = arith.constant dense<0.000000e+00> : vector<8x286xf32>
    %18 = tpu.matmul %17, %15, %cst_17 {dimension_numbers = #tpu.dot_dimension_numbers<[1], [0], [0], [1], [0, 0, 1, 1], [], []>} : vector<8x4xbf16>, vector<4x286xbf16>, vector<8x286xf32> -> vector<8x286xf32>
    %19 = arith.addf %13, %18 : vector<8x286xf32>
    %c0_18 = arith.constant 0 : index
    %c0_19 = arith.constant 0 : index
    %c18 = arith.constant 18 : index
    %20 = vector.load %arg2[%c0_18, %c0_19, %c18] : memref<1x4x324xbf16, #tpu.memory_space<vmem>>, vector<1x4x286xbf16>
    %21 = vector.shape_cast %20 : vector<1x4x286xbf16> to vector<4x286xbf16>
    %c3 = arith.constant 3 : index
    %c0_20 = arith.constant 0 : index
    %c0_21 = arith.constant 0 : index
    %22 = vector.load %arg4[%c3, %c0_20, %c0_21] : memref<9x8x4xbf16, #tpu.memory_space<vmem>>, vector<1x8x4xbf16>
    %23 = vector.shape_cast %22 : vector<1x8x4xbf16> to vector<8x4xbf16>
    %cst_22 = arith.constant dense<0.000000e+00> : vector<8x286xf32>
    %24 = tpu.matmul %23, %21, %cst_22 {dimension_numbers = #tpu.dot_dimension_numbers<[1], [0], [0], [1], [0, 0, 1, 1], [], []>} : vector<8x4xbf16>, vector<4x286xbf16>, vector<8x286xf32> -> vector<8x286xf32>
    %25 = arith.addf %19, %24 : vector<8x286xf32>
    %c0_23 = arith.constant 0 : index
    %c0_24 = arith.constant 0 : index
    %c19 = arith.constant 19 : index
    %26 = vector.load %arg2[%c0_23, %c0_24, %c19] : memref<1x4x324xbf16, #tpu.memory_space<vmem>>, vector<1x4x286xbf16>
    %27 = vector.shape_cast %26 : vector<1x4x286xbf16> to vector<4x286xbf16>
    %c4 = arith.constant 4 : index
    %c0_25 = arith.constant 0 : index
    %c0_26 = arith.constant 0 : index
    %28 = vector.load %arg4[%c4, %c0_25, %c0_26] : memref<9x8x4xbf16, #tpu.memory_space<vmem>>, vector<1x8x4xbf16>
    %29 = vector.shape_cast %28 : vector<1x8x4xbf16> to vector<8x4xbf16>
    %cst_27 = arith.constant dense<0.000000e+00> : vector<8x286xf32>
    %30 = tpu.matmul %29, %27, %cst_27 {dimension_numbers = #tpu.dot_dimension_numbers<[1], [0], [0], [1], [0, 0, 1, 1], [], []>} : vector<8x4xbf16>, vector<4x286xbf16>, vector<8x286xf32> -> vector<8x286xf32>
    %31 = arith.addf %25, %30 : vector<8x286xf32>
    %c0_28 = arith.constant 0 : index
    %c0_29 = arith.constant 0 : index
    %c20 = arith.constant 20 : index
    %32 = vector.load %arg2[%c0_28, %c0_29, %c20] : memref<1x4x324xbf16, #tpu.memory_space<vmem>>, vector<1x4x286xbf16>
    %33 = vector.shape_cast %32 : vector<1x4x286xbf16> to vector<4x286xbf16>
    %c5 = arith.constant 5 : index
    %c0_30 = arith.constant 0 : index
    %c0_31 = arith.constant 0 : index
    %34 = vector.load %arg4[%c5, %c0_30, %c0_31] : memref<9x8x4xbf16, #tpu.memory_space<vmem>>, vector<1x8x4xbf16>
    %35 = vector.shape_cast %34 : vector<1x8x4xbf16> to vector<8x4xbf16>
    %cst_32 = arith.constant dense<0.000000e+00> : vector<8x286xf32>
    %36 = tpu.matmul %35, %33, %cst_32 {dimension_numbers = #tpu.dot_dimension_numbers<[1], [0], [0], [1], [0, 0, 1, 1], [], []>} : vector<8x4xbf16>, vector<4x286xbf16>, vector<8x286xf32> -> vector<8x286xf32>
    %37 = arith.addf %31, %36 : vector<8x286xf32>
    %c0_33 = arith.constant 0 : index
    %c0_34 = arith.constant 0 : index
    %c36 = arith.constant 36 : index
    %38 = vector.load %arg2[%c0_33, %c0_34, %c36] : memref<1x4x324xbf16, #tpu.memory_space<vmem>>, vector<1x4x286xbf16>
    %39 = vector.shape_cast %38 : vector<1x4x286xbf16> to vector<4x286xbf16>
    %c6 = arith.constant 6 : index
    %c0_35 = arith.constant 0 : index
    %c0_36 = arith.constant 0 : index
    %40 = vector.load %arg4[%c6, %c0_35, %c0_36] : memref<9x8x4xbf16, #tpu.memory_space<vmem>>, vector<1x8x4xbf16>
    %41 = vector.shape_cast %40 : vector<1x8x4xbf16> to vector<8x4xbf16>
    %cst_37 = arith.constant dense<0.000000e+00> : vector<8x286xf32>
    %42 = tpu.matmul %41, %39, %cst_37 {dimension_numbers = #tpu.dot_dimension_numbers<[1], [0], [0], [1], [0, 0, 1, 1], [], []>} : vector<8x4xbf16>, vector<4x286xbf16>, vector<8x286xf32> -> vector<8x286xf32>
    %43 = arith.addf %37, %42 : vector<8x286xf32>
    %c0_38 = arith.constant 0 : index
    %c0_39 = arith.constant 0 : index
    %c37 = arith.constant 37 : index
    %44 = vector.load %arg2[%c0_38, %c0_39, %c37] : memref<1x4x324xbf16, #tpu.memory_space<vmem>>, vector<1x4x286xbf16>
    %45 = vector.shape_cast %44 : vector<1x4x286xbf16> to vector<4x286xbf16>
    %c7 = arith.constant 7 : index
    %c0_40 = arith.constant 0 : index
    %c0_41 = arith.constant 0 : index
    %46 = vector.load %arg4[%c7, %c0_40, %c0_41] : memref<9x8x4xbf16, #tpu.memory_space<vmem>>, vector<1x8x4xbf16>
    %47 = vector.shape_cast %46 : vector<1x8x4xbf16> to vector<8x4xbf16>
    %cst_42 = arith.constant dense<0.000000e+00> : vector<8x286xf32>
    %48 = tpu.matmul %47, %45, %cst_42 {dimension_numbers = #tpu.dot_dimension_numbers<[1], [0], [0], [1], [0, 0, 1, 1], [], []>} : vector<8x4xbf16>, vector<4x286xbf16>, vector<8x286xf32> -> vector<8x286xf32>
    %49 = arith.addf %43, %48 : vector<8x286xf32>
    %c0_43 = arith.constant 0 : index
    %c0_44 = arith.constant 0 : index
    %c38 = arith.constant 38 : index
    %50 = vector.load %arg2[%c0_43, %c0_44, %c38] : memref<1x4x324xbf16, #tpu.memory_space<vmem>>, vector<1x4x286xbf16>
    %51 = vector.shape_cast %50 : vector<1x4x286xbf16> to vector<4x286xbf16>
    %c8 = arith.constant 8 : index
    %c0_45 = arith.constant 0 : index
    %c0_46 = arith.constant 0 : index
    %52 = vector.load %arg4[%c8, %c0_45, %c0_46] : memref<9x8x4xbf16, #tpu.memory_space<vmem>>, vector<1x8x4xbf16>
    %53 = vector.shape_cast %52 : vector<1x8x4xbf16> to vector<8x4xbf16>
    %cst_47 = arith.constant dense<0.000000e+00> : vector<8x286xf32>
    %54 = tpu.matmul %53, %51, %cst_47 {dimension_numbers = #tpu.dot_dimension_numbers<[1], [0], [0], [1], [0, 0, 1, 1], [], []>} : vector<8x4xbf16>, vector<4x286xbf16>, vector<8x286xf32> -> vector<8x286xf32>
    %55 = arith.addf %49, %54 : vector<8x286xf32>
    %c0_48 = arith.constant 0 : index
    %c0_49 = arith.constant 0 : index
    %56 = vector.load %arg8[%c0_48, %c0_49] : memref<8x286xf32, #tpu.memory_space<vmem>>, vector<8x286xf32>
    %57 = arith.addf %56, %55 : vector<8x286xf32>
    %c0_50 = arith.constant 0 : index
    %c0_51 = arith.constant 0 : index
    %58 = vector.load %arg8[%c0_50, %c0_51] : memref<8x286xf32, #tpu.memory_space<vmem>>, vector<8x286xf32>
    tpu.vector_store %arg8[%c0_50, %c0_51], %57 {strides = array<i32>} : memref<8x286xf32, #tpu.memory_space<vmem>>, vector<8x286xf32>,
    %c0_i32_52 = arith.constant 0 : i32
    %59 = arith.cmpi eq, %arg1, %c0_i32_52 : i32
    %60 = arith.extui %59 : i1 to i32
    %c0_i32_53 = arith.constant 0 : i32
    %61 = arith.cmpi ne, %60, %c0_i32_53 : i32
    scf.if %61 {
      %cst_54 = arith.constant 0.000000e+00 : f32
      %62 = vector.broadcast %cst_54 : f32 to vector<1x286xf32>
      %cst_55 = arith.constant 0xFF800000 : f32
      %63 = vector.broadcast %cst_55 : f32 to vector<1x286xf32>
      %c0_56 = arith.constant 0 : index
      %c0_57 = arith.constant 0 : index
      %c0_58 = arith.constant 0 : index
      %64 = vector.load %arg3[%c0_56, %c0_57, %c0_58] : memref<1x1x324xf32, #tpu.memory_space<vmem>>, vector<1x1x286xf32>
      %65 = vector.shape_cast %64 : vector<1x1x286xf32> to vector<1x286xf32>
      %cst_59 = arith.constant 0.000000e+00 : f32
      %66 = vector.broadcast %cst_59 : f32 to vector<1x286xf32>
      %67 = arith.maximumf %65, %66 : vector<1x286xf32>
      %68 = arith.addf %62, %67 : vector<1x286xf32>
      %69 = arith.maximumf %63, %65 : vector<1x286xf32>
      %c0_60 = arith.constant 0 : index
      %c0_61 = arith.constant 0 : index
      %c1_62 = arith.constant 1 : index
      %70 = vector.load %arg3[%c0_60, %c0_61, %c1_62] : memref<1x1x324xf32, #tpu.memory_space<vmem>>, vector<1x1x286xf32>
      %71 = vector.shape_cast %70 : vector<1x1x286xf32> to vector<1x286xf32>
      %cst_63 = arith.constant 0.000000e+00 : f32
      %72 = vector.broadcast %cst_63 : f32 to vector<1x286xf32>
      %73 = arith.maximumf %71, %72 : vector<1x286xf32>
      %74 = arith.addf %68, %73 : vector<1x286xf32>
      %75 = arith.maximumf %69, %71 : vector<1x286xf32>
      %c0_64 = arith.constant 0 : index
      %c0_65 = arith.constant 0 : index
      %c2_66 = arith.constant 2 : index
      %76 = vector.load %arg3[%c0_64, %c0_65, %c2_66] : memref<1x1x324xf32, #tpu.memory_space<vmem>>, vector<1x1x286xf32>
      %77 = vector.shape_cast %76 : vector<1x1x286xf32> to vector<1x286xf32>
      %cst_67 = arith.constant 0.000000e+00 : f32
      %78 = vector.broadcast %cst_67 : f32 to vector<1x286xf32>
      %79 = arith.maximumf %77, %78 : vector<1x286xf32>
      %80 = arith.addf %74, %79 : vector<1x286xf32>
      %81 = arith.maximumf %75, %77 : vector<1x286xf32>
      %c0_68 = arith.constant 0 : index
      %c0_69 = arith.constant 0 : index
      %c18_70 = arith.constant 18 : index
      %82 = vector.load %arg3[%c0_68, %c0_69, %c18_70] : memref<1x1x324xf32, #tpu.memory_space<vmem>>, vector<1x1x286xf32>
      %83 = vector.shape_cast %82 : vector<1x1x286xf32> to vector<1x286xf32>
      %cst_71 = arith.constant 0.000000e+00 : f32
      %84 = vector.broadcast %cst_71 : f32 to vector<1x286xf32>
      %85 = arith.maximumf %83, %84 : vector<1x286xf32>
      %86 = arith.addf %80, %85 : vector<1x286xf32>
      %87 = arith.maximumf %81, %83 : vector<1x286xf32>
      %c0_72 = arith.constant 0 : index
      %c0_73 = arith.constant 0 : index
      %c19_74 = arith.constant 19 : index
      %88 = vector.load %arg3[%c0_72, %c0_73, %c19_74] : memref<1x1x324xf32, #tpu.memory_space<vmem>>, vector<1x1x286xf32>
      %89 = vector.shape_cast %88 : vector<1x1x286xf32> to vector<1x286xf32>
      %cst_75 = arith.constant 0.000000e+00 : f32
      %90 = vector.broadcast %cst_75 : f32 to vector<1x286xf32>
      %91 = arith.maximumf %89, %90 : vector<1x286xf32>
      %92 = arith.addf %86, %91 : vector<1x286xf32>
      %93 = arith.maximumf %87, %89 : vector<1x286xf32>
      %c0_76 = arith.constant 0 : index
      %c0_77 = arith.constant 0 : index
      %c20_78 = arith.constant 20 : index
      %94 = vector.load %arg3[%c0_76, %c0_77, %c20_78] : memref<1x1x324xf32, #tpu.memory_space<vmem>>, vector<1x1x286xf32>
      %95 = vector.shape_cast %94 : vector<1x1x286xf32> to vector<1x286xf32>
      %cst_79 = arith.constant 0.000000e+00 : f32
      %96 = vector.broadcast %cst_79 : f32 to vector<1x286xf32>
      %97 = arith.maximumf %95, %96 : vector<1x286xf32>
      %98 = arith.addf %92, %97 : vector<1x286xf32>
      %99 = arith.maximumf %93, %95 : vector<1x286xf32>
      %c0_80 = arith.constant 0 : index
      %c0_81 = arith.constant 0 : index
      %c36_82 = arith.constant 36 : index
      %100 = vector.load %arg3[%c0_80, %c0_81, %c36_82] : memref<1x1x324xf32, #tpu.memory_space<vmem>>, vector<1x1x286xf32>
      %101 = vector.shape_cast %100 : vector<1x1x286xf32> to vector<1x286xf32>
      %cst_83 = arith.constant 0.000000e+00 : f32
      %102 = vector.broadcast %cst_83 : f32 to vector<1x286xf32>
      %103 = arith.maximumf %101, %102 : vector<1x286xf32>
      %104 = arith.addf %98, %103 : vector<1x286xf32>
      %105 = arith.maximumf %99, %101 : vector<1x286xf32>
      %c0_84 = arith.constant 0 : index
      %c0_85 = arith.constant 0 : index
      %c37_86 = arith.constant 37 : index
      %106 = vector.load %arg3[%c0_84, %c0_85, %c37_86] : memref<1x1x324xf32, #tpu.memory_space<vmem>>, vector<1x1x286xf32>
      %107 = vector.shape_cast %106 : vector<1x1x286xf32> to vector<1x286xf32>
      %cst_87 = arith.constant 0.000000e+00 : f32
      %108 = vector.broadcast %cst_87 : f32 to vector<1x286xf32>
      %109 = arith.maximumf %107, %108 : vector<1x286xf32>
      %110 = arith.addf %104, %109 : vector<1x286xf32>
      %111 = arith.maximumf %105, %107 : vector<1x286xf32>
      %c0_88 = arith.constant 0 : index
      %c0_89 = arith.constant 0 : index
      %c38_90 = arith.constant 38 : index
      %112 = vector.load %arg3[%c0_88, %c0_89, %c38_90] : memref<1x1x324xf32, #tpu.memory_space<vmem>>, vector<1x1x286xf32>
      %113 = vector.shape_cast %112 : vector<1x1x286xf32> to vector<1x286xf32>
      %cst_91 = arith.constant 0.000000e+00 : f32
      %114 = vector.broadcast %cst_91 : f32 to vector<1x286xf32>
      %115 = arith.maximumf %113, %114 : vector<1x286xf32>
      %116 = arith.addf %110, %115 : vector<1x286xf32>
      %117 = arith.maximumf %111, %113 : vector<1x286xf32>
      %cst_92 = arith.constant 4.000000e+00 : f32
      %118 = vector.broadcast %cst_92 : f32 to vector<1x286xf32>
      %119 = arith.mulf %116, %118 : vector<1x286xf32>
      %cst_93 = arith.constant 9.99999974E-6 : f32
      %120 = vector.broadcast %cst_93 : f32 to vector<1x286xf32>
      %121 = arith.maximumf %119, %120 : vector<1x286xf32>
      %c0_94 = arith.constant 0 : index
      %c0_95 = arith.constant 0 : index
      %122 = vector.load %arg8[%c0_94, %c0_95] : memref<8x286xf32, #tpu.memory_space<vmem>>, vector<8x286xf32>
      %123 = vector.broadcast %121 : vector<1x286xf32> to vector<8x286xf32>
      %124 = arith.divf %122, %123 : vector<8x286xf32>
      %c0_96 = arith.constant 0 : index
      %c0_97 = arith.constant 0 : index
      %125 = vector.load %arg5[%c0_96, %c0_97] : memref<8x1xf32, #tpu.memory_space<vmem>>, vector<8x1xf32>
      %126 = vector.broadcast %125 : vector<8x1xf32> to vector<8x286xf32>
      %127 = arith.addf %124, %126 : vector<8x286xf32>
      %c0_98 = arith.constant 0 : index
      %c0_99 = arith.constant 0 : index
      %c0_100 = arith.constant 0 : index
      %128 = vector.load %arg6[%c0_98, %c0_99, %c0_100] : memref<1x8x286xf32, #tpu.memory_space<vmem>>, vector<1x8x286xf32>
      %129 = vector.shape_cast %128 : vector<1x8x286xf32> to vector<8x286xf32>
      %130 = vector.shape_cast %127 : vector<8x286xf32> to vector<1x8x286xf32>
      tpu.vector_store %arg6[%c0_98, %c0_99, %c0_100], %130 {strides = array<i32>} : memref<1x8x286xf32, #tpu.memory_space<vmem>>, vector<1x8x286xf32>,
      %c0_101 = arith.constant 0 : index
      %c0_102 = arith.constant 0 : index
      %c0_103 = arith.constant 0 : index
      %131 = vector.load %arg7[%c0_101, %c0_102, %c0_103] : memref<1x1x286xf32, #tpu.memory_space<vmem>>, vector<1x1x286xf32>
      %132 = vector.shape_cast %131 : vector<1x1x286xf32> to vector<1x286xf32>
      %133 = vector.shape_cast %117 : vector<1x286xf32> to vector<1x1x286xf32>
      tpu.vector_store %arg7[%c0_101, %c0_102, %c0_103], %133 {strides = array<i32>} : memref<1x1x286xf32, #tpu.memory_space<vmem>>, vector<1x1x286xf32>,
    } else {
    }
    return
  }
  func.func @transform_0(%arg0: i32, %arg1: i32) -> (i32, i32, i32) {
    %c0_i32 = arith.constant 0 : i32
    %c0_i32_0 = arith.constant 0 : i32
    return %arg0, %arg1, %c0_i32 : i32, i32, i32
  }
  func.func @transform_1(%arg0: i32, %arg1: i32) -> (i32, i32, i32) {
    %c0_i32 = arith.constant 0 : i32
    %c0_i32_0 = arith.constant 0 : i32
    %c0_i32_1 = arith.constant 0 : i32
    return %arg0, %c0_i32, %c0_i32_0 : i32, i32, i32
  }
  func.func @transform_2(%arg0: i32, %arg1: i32) -> (i32, i32, i32) {
    %c0_i32 = arith.constant 0 : i32
    %c0_i32_0 = arith.constant 0 : i32
    %c0_i32_1 = arith.constant 0 : i32
    %c0_i32_2 = arith.constant 0 : i32
    return %c0_i32, %c0_i32_0, %c0_i32_1 : i32, i32, i32
  }
  func.func @transform_3(%arg0: i32, %arg1: i32) -> (i32, i32) {
    %c0_i32 = arith.constant 0 : i32
    %c0_i32_0 = arith.constant 0 : i32
    %c0_i32_1 = arith.constant 0 : i32
    return %c0_i32, %c0_i32_0 : i32, i32
  }
  func.func @transform_4(%arg0: i32, %arg1: i32) -> (i32, i32, i32) {
    %c0_i32 = arith.constant 0 : i32
    %c0_i32_0 = arith.constant 0 : i32
    %c0_i32_1 = arith.constant 0 : i32
    return %arg0, %c0_i32, %c0_i32_0 : i32, i32, i32
  }
  func.func @transform_5(%arg0: i32, %arg1: i32) -> (i32, i32, i32) {
    %c0_i32 = arith.constant 0 : i32
    %c0_i32_0 = arith.constant 0 : i32
    %c0_i32_1 = arith.constant 0 : i32
    return %arg0, %c0_i32, %c0_i32_0 : i32, i32, i32
  }
}

</mosaic_0001>

<bundles_post_ra>
// kernel: sparse_conv.1
= control target key start
LH: loop header
LB: loop body
LE: loop exit
PB: predicated region body
PF: predicated region fallthrough
CT: control target
= control target key end

     0   :  { %s1898_s18 = smov 0   ;;  %s1900_s19 = smov 0   ;;  %s2205_s0 = inlined_call_operand.vmem [shape: bf16[2,4,324], index: 0, kind: input, shape index: {}]   ;;  %s2206_s1 = inlined_call_operand.vmem [shape: f32[2,1,324], index: 1, kind: input, shape index: {}]   ;;  %s2207_s2 = inlined_call_operand.vmem [shape: bf16[9,8,4], index: 2, kind: input, shape index: {}]   ;;  %s2208_s3 = inlined_call_operand.vmem [shape: f32[8,1], index: 3, kind: input, shape index: {}]   ;;  %s2209_s4 = inlined_call_operand.vmem [shape: f32[2,8,286], index: 4, kind: output, shape index: {0}]   ;;  %s2210_s5 = inlined_call_operand.vmem [shape: f32[2,1,286], index: 5, kind: output, shape index: {1}]  }
   0x1   :  { %s1902_s20 = smov 0  }
   0x2 LB: > { %s28_s21 = sadd.s32 1, %s1850_s19  ;;  %p1666_p0 = scmp.ge.s32.totalorder %s1854_s20, 1  ;;  %s1854_s20 = sphi %s1902_s20, %s16_s20   ;;  %s1850_s19 = sphi %s1900_s19, %s2212_s19   ;;  %s1846_s18 = sphi %s1898_s18, %s2211_s18  }
   0x3   : > { %p30_p1 = scmp.ge.s32.totalorder %s28_s21, 2  ;;  %p217_p2 = scmp.lt.s32.totalorder %s1854_s20, 3 }
   0x5   : > { %s2214_s21 = smov (%p30_p1, %s28_s21), 0  ;;  %p218_p3 = pnand %p1666_p0, %p217_p2 }
   0x6   : > { %p257_p4 = scmp.lt.s32.totalorder (!%p218_p3), %s1846_s18, 1  ;;  %v297_v0 = vlaneseq (!%p218_p3)  ;;  %v1856_v1 = vmov (!%p218_p3), 1983009808   ;;  %v1857_v3 = vmov (!%p218_p3), 0.0   ;;  %vm1858_vm0 = vmmov (!%p218_p3), 0   ;;  %s1860_s26 = smov (!%p218_p3), 127  }
   0x7   : > { %221 = sbr.rel (%p218_p3) target bundleno = 435 (0x1b3), region = 36  ;;  %v295_v2 = vunpack.c.l.s4 (!%p218_p3), %v1856_v1  ;;  %1724 = vmatprep.subr.bf16.mxu1 (!%p218_p3), %v1857_v3  ;;  %1726 = vmatprep.mubr.msk.bf16.mxu1 (!%p218_p3), %vm1858_vm0, %v1857_v3  ;;  %v1859_v6 = vmov (!%p218_p3), 0   ;;  %s1861_s27 = smov (!%p218_p3), 126   ;;  %v1530_v50 = vld [vmem:[%s2208_s3] sm:$0xff] (!%p218_p3)  ;;  %vm322_vm1 = vcmask (!%p218_p3), 1041408   ;;  %vm315_vm2 = vcmask (!%p218_p3), 1039360  }
   0x8   : > { %v1920_v4 = vshrl.u32 (!%p218_p3), %v297_v0, 7  ;;  %364 = vmatprep.mubr.bf16.mxu0 (!%p218_p3), %v1859_v6  ;;  %1817 = vset.pattern.permute.xlu0 (!%p218_p3), %v1859_v6  ;;  %s1862_s28 = smov (!%p218_p3), 110   ;;  %s1863_s29 = smov (!%p218_p3), 109   ;;  %v1669_v55 = vld [vmem:[%s2207_s2 + $0x4] sm:$0xf] (!%p218_p3)  ;;  %vm318_vm3 = vcmask (!%p218_p3), 31744  }
   0x9   : > { %v296_v5 = vunpack.c.0.s8 (!%p218_p3), %v295_v2  ;;  %s1864_s30 = smov (!%p218_p3), 108   ;;  %s1865_s6 = smov (!%p218_p3), 92   ;;  %vm532_vm4 = vcmask (!%p218_p3), 1031168   ;;  %v289_v2 = vld [vmem:[%s2207_s2] sm:$0xf] (!%p218_p3)  ;;  %vm657_vm5 = vcmask (!%p218_p3), 900096  }
   0xa   : > { %s1866_s7 = smov (!%p218_p3), 91   ;;  %s1867_s8 = smov (!%p218_p3), 90   ;;  %vm782_vm6 = vcmask (!%p218_p3), 891904   ;;  %vm907_vm7 = vcmask (!%p218_p3), 883712   ;;  %vm1032_vm8 = vcmask (!%p218_p3), 752640   ;;  %vm1157_vm9 = vcmask (!%p218_p3), 744448  }
   0xb   : > { %v1928_v7 = vsub.s32 (!%p218_p3), %v296_v5, %v1920_v4  ;;  %vm1282_vm10 = vcmask (!%p218_p3), 736256   ;;  %vm286_vm11 = vcmask (!%p218_p3), 244736   ;;  %vm1544_vm12 = vcmp.lt.s32.totalorder (!%p218_p3), %v297_v0, 286 }
   0xc   : > { %287 = vst.msk [vmem:[#allocation2 + $0x10] sm:$0xff] (!%p218_p3), %vm286_vm11, %v1857_v3 }
   0xe   : > { %s2216_s18 = smov (!%p257_p4, %s1846_s18), 1 }
   0xf   : > { %s1778_s22 = smul.u32 6, %s2216_s18 }
  0x10   : > { %s1779_s9 = smul.u32 3, %s2216_s18 }
  0x11   : > { %s1933_s25 = scalar_lea.vmem %s2205_s0, %s1778_s22 }
  0x12   : > { %v288_v8 = vld [vmem:[%s1933_s25] sm:$0x3f]  ;;  %s269_s12 = scalar_lea.vmem %s2206_s1, %s1779_s9  ;;  %s278_s15 = scalar_lea.vmem %s2210_s5, %s1779_s9 }
  0x13   : > { %v506_v9 = vld [vmem:[%s1933_s25] sm:$0x3f]  ;;  %v1938_v10 = vrot.slane %v288_v8, %v1928_v7  ;;  %v293_v11 = vcombine.high %v288_v8, %v288_v8  ;;  %s1780_s9 = smul.u32 24, %s2216_s18 }
  0x14   : > { %v517_v14 = vrot.slane %v506_v9, %v1928_v7  ;;  %v510_v15 = vcombine.high %v506_v9, %v506_v9  ;;  %v631_v16 = vld [vmem:[%s1933_s25] sm:$0x3f] }
  0x15   : > { %309 = vrot.lane.b32.xlu0 %v1938_v10, %s1860_s26  ;;  %v1943_v12 = vrot.slane %v293_v11, %v1928_v7  ;;  %v1947_v13 = vcombine.high %v1938_v10, %v1938_v10  ;;  %v642_v19 = vrot.slane %v631_v16, %v1928_v7  ;;  %v635_v20 = vcombine.high %v631_v16, %v631_v16  ;;  %v756_v21 = vld [vmem:[%s1933_s25] sm:$0x3f]  ;;  %s274_s22 = scalar_lea.vmem %s2209_s4, %s1780_s9 }
  0x16   : > { %v525_v17 = vcombine.high %v517_v14, %v517_v14  ;;  %v524_v18 = vrot.slane %v510_v15, %v1928_v7  ;;  %v767_v24 = vrot.slane %v756_v21, %v1928_v7  ;;  %v760_v25 = vcombine.high %v756_v21, %v756_v21  ;;  %v881_v26 = vld [vmem:[%s1933_s25] sm:$0x3f] }
  0x17   : > { %313 = vrot.lane.b32.xlu1 %v1943_v12, %s1860_s26  ;;  %v650_v22 = vcombine.high %v642_v19, %v642_v19  ;;  %v649_v23 = vrot.slane %v635_v20, %v1928_v7  ;;  %v892_v29 = vrot.slane %v881_v26, %v1928_v7  ;;  %v885_v30 = vcombine.high %v881_v26, %v881_v26  ;;  %v1006_v31 = vld [vmem:[%s1933_s25] sm:$0x3f] }
  0x18   : > { %v775_v27 = vcombine.high %v767_v24, %v767_v24  ;;  %v774_v28 = vrot.slane %v760_v25, %v1928_v7  ;;  %v1017_v34 = vrot.slane %v1006_v31, %v1928_v7  ;;  %v1010_v35 = vcombine.high %v1006_v31, %v1006_v31  ;;  %v1131_v36 = vld [vmem:[%s1933_s25] sm:$0x3f]  ;;  %v1684_v31 = vld [vmem:[%s2207_s2 + $0x10] sm:$0xf] }
  0x19   : > { %311 = vrot.lane.b32.xlu0 %v1947_v13, %s1860_s26  ;;  %v900_v32 = vcombine.high %v892_v29, %v892_v29  ;;  %v899_v33 = vrot.slane %v885_v30, %v1928_v7  ;;  %v1142_v39 = vrot.slane %v1131_v36, %v1928_v7  ;;  %v1135_v40 = vcombine.high %v1131_v36, %v1131_v36  ;;  %v1256_v41 = vld [vmem:[%s1933_s25] sm:$0x3f] }
  0x1a   : > { %v1025_v37 = vcombine.high %v1017_v34, %v1017_v34  ;;  %v1024_v38 = vrot.slane %v1010_v35, %v1928_v7  ;;  %v1267_v44 = vrot.slane %v1256_v41, %v1928_v7  ;;  %v1260_v45 = vcombine.high %v1256_v41, %v1256_v41  ;;  %v1997_v48 = vld [vmem:[%s269_s12] sm:$0x7] }
  0x1b   : > { %526 = vrot.lane.b32.xlu1 %v517_v14, %s1861_s27  ;;  %v1150_v42 = vcombine.high %v1142_v39, %v1142_v39  ;;  %v1149_v43 = vrot.slane %v1135_v40, %v1928_v7  ;;  %v2000_v49 = vmax.f32 %v1997_v48, 0.0  ;;  %v423_v58 = vsel %vm322_vm1, %v1943_v12, 0  ;;  %v1676_v14 = vld [vmem:[%s2207_s2 + $0x8] sm:$0xf] }
  0x1c   : > { %v1275_v46 = vcombine.high %v1267_v44, %v1267_v44  ;;  %v1274_v47 = vrot.slane %v1260_v45, %v1928_v7  ;;  %v417_v61 = vsel %vm322_vm1, %v1938_v10, 0 }
  0x1d   : > { %528 = vrot.lane.b32.xlu0 %v525_v17, %s1861_s27 }
  0x1f   : > { %530 = vrot.lane.b32.xlu1 %v524_v18, %s1861_s27 }
  0x21   : > { %651 = vrot.lane.b32.xlu0 %v642_v19, %s1862_s28 }
  0x23   : > { %653 = vrot.lane.b32.xlu1 %v650_v22, %s1862_s28 }
  0x25   : > { %655 = vrot.lane.b32.xlu0 %v649_v23, %s1862_s28  ;;  %v1680_v23 = vld [vmem:[%s2207_s2 + $0xc] sm:$0xf] }
  0x27   : > { %776 = vrot.lane.b32.xlu1 %v767_v24, %s1863_s29 }
  0x29   : > { %778 = vrot.lane.b32.xlu0 %v775_v27, %s1863_s29 }
  0x2b   : > { %780 = vrot.lane.b32.xlu1 %v774_v28, %s1863_s29 }
  0x2d   : > { %901 = vrot.lane.b32.xlu0 %v892_v29, %s1864_s30 }
  0x2f   : > { %903 = vrot.lane.b32.xlu1 %v900_v32, %s1864_s30 }
  0x31   : > { %905 = vrot.lane.b32.xlu0 %v899_v33, %s1864_s30 }
  0x33   : > { %1026 = vrot.lane.b32.xlu1 %v1017_v34, %s1865_s6 }
  0x35   : > { %1028 = vrot.lane.b32.xlu0 %v1025_v37, %s1865_s6 }
  0x37   : > { %1030 = vrot.lane.b32.xlu1 %v1024_v38, %s1865_s6 }
  0x39   : > { %1151 = vrot.lane.b32.xlu0 %v1142_v39, %s1866_s7  ;;  %v1688_v39 = vld [vmem:[%s2207_s2 + $0x14] sm:$0xf] }
  0x3b   : > { %1153 = vrot.lane.b32.xlu1 %v1150_v42, %s1866_s7 }
  0x3d   : > { %1155 = vrot.lane.b32.xlu0 %v1149_v43, %s1866_s7 }
  0x3f   : > { %1276 = vrot.lane.b32.xlu1 %v1267_v44, %s1867_s8 }
  0x41   : > { %1278 = vrot.lane.b32.xlu0 %v1275_v46, %s1867_s8  ;;  %v1692_v46 = vld [vmem:[%s2207_s2 + $0x18] sm:$0xf] }
  0x43   : > { %1280 = vrot.lane.b32.xlu1 %v1274_v47, %s1867_s8 }
  0x45   : > { %1398 = vrot.lane.b32.xlu0 %v2000_v49, %s1860_s26 }
  0x47   : > { %1412 = vrot.lane.b32.xlu1 %v2000_v49, %s1861_s27 }
  0x49   : > { %1425 = vrot.lane.b32.xlu0 %v2000_v49, %s1862_s28 }
  0x4b   : > { %1438 = vrot.lane.b32.xlu1 %v2000_v49, %s1863_s29 }
  0x4d   : > { %1451 = vrot.lane.b32.xlu0 %v2000_v49, %s1864_s30 }
  0x4f   : > { %1464 = vrot.lane.b32.xlu1 %v2000_v49, %s1865_s6 }
  0x51   : > { %1477 = vrot.lane.b32.xlu0 %v2000_v49, %s1866_s7 }
  0x53   : > { %1490 = vrot.lane.b32.xlu1 %v2000_v49, %s1867_s8 }
  0x55   : > { %1406 = vrot.lane.b32.xlu0 %v1997_v48, %s1860_s26 }
  0x57   : > { %1419 = vrot.lane.b32.xlu1 %v1997_v48, %s1861_s27 }
  0x59   : > { %1432 = vrot.lane.b32.xlu0 %v1997_v48, %s1862_s28 }
  0x5b   : > { %1445 = vrot.lane.b32.xlu1 %v1997_v48, %s1863_s29 }
  0x5d   : > { %1458 = vrot.lane.b32.xlu0 %v1997_v48, %s1864_s30 }
  0x5f   : > { %1471 = vrot.lane.b32.xlu1 %v1997_v48, %s1865_s6 }
  0x61   : > { %1533 = vperm.xlu0 %1817, %v1530_v50  }
  0x63   : > { %1484 = vrot.lane.b32.xlu1 %v1997_v48, %s1866_s7 }
  0x67   : > { %1497 = vrot.lane.b32.xlu1 %v1997_v48, %s1867_s8 }
  0x87   : > { %v310_v51 = vpop.permute.xlu0 %309 }
  0x89   : > { %v314_v52 = vpop.permute.xlu1 %313 }
  0x8a   : > { %v330_v53 = vsel %vm322_vm1, %v314_v52, 0 }
  0x8b   : > { %v312_v54 = vpop.permute.xlu0 %311  ;;  %1725 = vmatpush3.bf16.msra.mxu1 %v330_v53 }
  0x8c   : > { %v317_v56 = vsel %vm315_vm2, %v312_v54, %v314_v52  ;;  %v316_v57 = vsel %vm315_vm2, %v310_v51, %v312_v54  ;;  %1730 = vmatprep.subr.bf16.mxu1 %v1857_v3 }
  0x8d   : > { %1670 = vmatprep.subr.msk.bf16.mxu0 %vm322_vm1, %v317_v56  ;;  %v324_v59 = vsel %vm322_vm1, %v316_v57, 0  ;;  %v527_v60 = vpop.permute.xlu1 %526 }
  0x8e   : > { %333 = vmatpush1.bf16.msra.mxu0 %v324_v59  ;;  %1727 = vmatmul.mubr.msk.bf16.vlgmr.msra.gmra.mrb[0].mxu1 %vm318_vm3, %v1669_v55  ;;  %v1700_v59 = vld [vmem:[%s2207_s2 + $0x20] sm:$0xf] }
  0x8f   : > { %1673 = vmatprep.subr.msk.bf16.mxu0 %vm322_vm1, %v1947_v13  ;;  %v529_v62 = vpop.permute.xlu0 %528  ;;  %1731 = vmatpush3.bf16.msra.mxu1 %v423_v58 }
  0x90   : > { %1732 = vmatprep.mubr.msk.bf16.mxu1 %vm1858_vm0, %v1857_v3  ;;  %1736 = vmatprep.subr.bf16.mxu1 %v1857_v3  ;;  %v533_v7 = vsel %vm532_vm4, %v527_v60, %v529_v62 }
  0x91   : > { %1671 = vmatmul.mubr.msk.bf16.vlgmr.msra.gmra.mrb[0].mxu0 %vm318_vm3, %v1669_v55  ;;  %v531_v63 = vpop.permute.xlu1 %530  ;;  %v539_v10 = vsel %vm322_vm1, %v533_v7, 0  ;;  %v1696_v55 = vld [vmem:[%s2207_s2 + $0x1c] sm:$0xf] }
  0x92   : > { %426 = vmatpush1.bf16.msra.mxu0 %v417_v61  ;;  %v534_v1 = vsel %vm532_vm4, %v529_v62, %v531_v63  ;;  %457 = vmatprep.mubr.bf16.mxu0 %v1859_v6  ;;  %v545_v8 = vsel %vm322_vm1, %v531_v63, 0 }
  0x93   : > { %1677 = vmatprep.subr.msk.bf16.mxu0 %vm322_vm1, %v534_v1  ;;  %v652_v5 = vpop.permute.xlu0 %651 }
  0x95   : > { %v654_v9 = vpop.permute.xlu1 %653 }
  0x96   : > { %1733 = vmatmul.mubr.msk.bf16.vlgmr.msra.gmra.mrb[4].mxu1 %vm318_vm3, %v289_v2  ;;  %v658_v16 = vsel %vm657_vm5, %v652_v5, %v654_v9 }
  0x97   : > { %1737 = vmatpush3.bf16.msra.mxu1 %v545_v8  ;;  %1738 = vmatprep.mubr.msk.bf16.mxu1 %vm1858_vm0, %v1857_v3  ;;  %v656_v11 = vpop.permute.xlu0 %655  ;;  %v664_v19 = vsel %vm322_vm1, %v658_v16, 0 }
  0x98   : > { %v659_v12 = vsel %vm657_vm5, %v654_v9, %v656_v11  ;;  %1742 = vmatprep.subr.bf16.mxu1 %v1857_v3  ;;  %v670_v17 = vsel %vm322_vm1, %v656_v11, 0 }
  0x99   : > { %1674 = vmatmul.mubr.msk.bf16.vlgmr.msra.gmra.mrb[4].mxu0 %vm318_vm3, %v289_v2  ;;  %v777_v13 = vpop.permute.xlu1 %776 }
  0x9a   : > { %548 = vmatpush1.bf16.msra.mxu0 %v539_v10  ;;  %579 = vmatprep.mubr.bf16.mxu0 %v1859_v6 }
  0x9b   : > { %1681 = vmatprep.subr.msk.bf16.mxu0 %vm322_vm1, %v659_v12  ;;  %v779_v15 = vpop.permute.xlu0 %778 }
  0x9c   : > { %v783_v24 = vsel %vm782_vm6, %v777_v13, %v779_v15 }
  0x9d   : > { %v781_v18 = vpop.permute.xlu1 %780  ;;  %v789_v27 = vsel %vm322_vm1, %v783_v24, 0 }
  0x9e   : > { %1739 = vmatmul.mubr.msk.bf16.vlgmr.msra.gmra.mrb[8].mxu1 %vm318_vm3, %v1676_v14  ;;  %v784_v21 = vsel %vm782_vm6, %v779_v15, %v781_v18  ;;  %v795_v25 = vsel %vm322_vm1, %v781_v18, 0 }
  0x9f   : > { %1743 = vmatpush3.bf16.msra.mxu1 %v670_v17  ;;  %1744 = vmatprep.mubr.msk.bf16.mxu1 %vm1858_vm0, %v1857_v3  ;;  %v902_v20 = vpop.permute.xlu0 %901 }
  0xa0   : > { %1748 = vmatprep.subr.bf16.mxu1 %v1857_v3 }
  0xa1   : > { %1678 = vmatmul.mubr.msk.bf16.vlgmr.msra.gmra.mrb[8].mxu0 %vm318_vm3, %v1676_v14  ;;  %v904_v22 = vpop.permute.xlu1 %903 }
  0xa2   : > { %673 = vmatpush1.bf16.msra.mxu0 %v664_v19  ;;  %704 = vmatprep.mubr.bf16.mxu0 %v1859_v6  ;;  %v908_v32 = vsel %vm907_vm7, %v902_v20, %v904_v22 }
  0xa3   : > { %1685 = vmatprep.subr.msk.bf16.mxu0 %vm322_vm1, %v784_v21  ;;  %v906_v26 = vpop.permute.xlu0 %905  ;;  %v914_v35 = vsel %vm322_vm1, %v908_v32, 0 }
  0xa4   : > { %v909_v29 = vsel %vm907_vm7, %v904_v22, %v906_v26  ;;  %v920_v33 = vsel %vm322_vm1, %v906_v26, 0 }
  0xa5   : > { %v1027_v28 = vpop.permute.xlu1 %1026 }
  0xa6   : > { %1745 = vmatmul.mubr.msk.bf16.vlgmr.msra.gmra.mrb[12].mxu1 %vm318_vm3, %v1680_v23 }
  0xa7   : > { %1749 = vmatpush3.bf16.msra.mxu1 %v795_v25  ;;  %1750 = vmatprep.mubr.msk.bf16.mxu1 %vm1858_vm0, %v1857_v3  ;;  %v1029_v30 = vpop.permute.xlu0 %1028 }
  0xa8   : > { %1754 = vmatprep.subr.bf16.mxu1 %v1857_v3  ;;  %v1033_v40 = vsel %vm1032_vm8, %v1027_v28, %v1029_v30 }
  0xa9   : > { %1682 = vmatmul.mubr.msk.bf16.vlgmr.msra.gmra.mrb[12].mxu0 %vm318_vm3, %v1680_v23  ;;  %v1031_v34 = vpop.permute.xlu1 %1030  ;;  %v1039_v43 = vsel %vm322_vm1, %v1033_v40, 0 }
  0xaa   : > { %798 = vmatpush1.bf16.msra.mxu0 %v789_v27  ;;  %829 = vmatprep.mubr.bf16.mxu0 %v1859_v6  ;;  %v1034_v37 = vsel %vm1032_vm8, %v1029_v30, %v1031_v34  ;;  %v1045_v41 = vsel %vm322_vm1, %v1031_v34, 0 }
  0xab   : > { %1689 = vmatprep.subr.msk.bf16.mxu0 %vm322_vm1, %v909_v29  ;;  %v1152_v36 = vpop.permute.xlu0 %1151 }
  0xad   : > { %v1154_v38 = vpop.permute.xlu1 %1153 }
  0xae   : > { %1751 = vmatmul.mubr.msk.bf16.vlgmr.msra.gmra.mrb[16].mxu1 %vm318_vm3, %v1684_v31  ;;  %v1158_v47 = vsel %vm1157_vm9, %v1152_v36, %v1154_v38 }
  0xaf   : > { %1755 = vmatpush3.bf16.msra.mxu1 %v920_v33  ;;  %1756 = vmatprep.mubr.msk.bf16.mxu1 %vm1858_vm0, %v1857_v3  ;;  %v1156_v42 = vpop.permute.xlu0 %1155  ;;  %v1164_v53 = vsel %vm322_vm1, %v1158_v47, 0 }
  0xb0   : > { %1760 = vmatprep.subr.bf16.mxu1 %v1857_v3  ;;  %v1159_v45 = vsel %vm1157_vm9, %v1154_v38, %v1156_v42  ;;  %v1170_v50 = vsel %vm322_vm1, %v1156_v42, 0 }
  0xb1   : > { %1686 = vmatmul.mubr.msk.bf16.vlgmr.msra.gmra.mrb[16].mxu0 %vm318_vm3, %v1684_v31  ;;  %v1277_v44 = vpop.permute.xlu1 %1276 }
  0xb2   : > { %923 = vmatpush1.bf16.msra.mxu0 %v914_v35  ;;  %954 = vmatprep.mubr.bf16.mxu0 %v1859_v6 }
  0xb3   : > { %1693 = vmatprep.subr.msk.bf16.mxu0 %vm322_vm1, %v1034_v37  ;;  %v1279_v51 = vpop.permute.xlu0 %1278 }
  0xb4   : > { %v1283_v56 = vsel %vm1282_vm10, %v1277_v44, %v1279_v51 }
  0xb5   : > { %v1281_v52 = vpop.permute.xlu1 %1280  ;;  %v1289_v58 = vsel %vm322_vm1, %v1283_v56, 0 }
  0xb6   : > { %1757 = vmatmul.mubr.msk.bf16.vlgmr.msra.gmra.mrb[20].mxu1 %vm318_vm3, %v1688_v39  ;;  %v1284_v54 = vsel %vm1282_vm10, %v1279_v51, %v1281_v52  ;;  %v1295_v57 = vsel %vm322_vm1, %v1281_v52, 0 }
  0xb7   : > { %1761 = vmatpush3.bf16.msra.mxu1 %v1045_v41  ;;  %1762 = vmatprep.mubr.msk.bf16.mxu1 %vm1858_vm0, %v1857_v3  ;;  %v1399_v61 = vpop.permute.xlu0 %1398 }
  0xb8   : > { %1766 = vmatprep.subr.bf16.mxu1 %v1857_v3  ;;  %v1400_v62 = vrot.slane %v1399_v61, 1 }
  0xb9   : > { %1690 = vmatmul.mubr.msk.bf16.vlgmr.msra.gmra.mrb[20].mxu0 %vm318_vm3, %v1688_v39  ;;  %v1413_v60 = vpop.permute.xlu1 %1412 }
  0xba   : > { %1048 = vmatpush1.bf16.msra.mxu0 %v1039_v43  ;;  %1079 = vmatprep.mubr.bf16.mxu0 %v1859_v6  ;;  %v1414_v63 = vrot.slane %v1413_v60, 1  ;;  %v1402_v2 = vsel %vm315_vm2, %v1399_v61, %v1400_v62 }
  0xbb   : > { %1697 = vmatprep.subr.msk.bf16.mxu0 %vm322_vm1, %v1159_v45  ;;  %v1404_v7 = vadd.f32 %v1402_v2, %v2000_v49 }
  0xbc   : > { %v1416_v5 = vsel %vm532_vm4, %v1413_v60, %v1414_v63 }
  0xbd   : > { %v1439_v1 = vpop.permute.xlu1 %1438  ;;  %v1418_v10 = vadd.f32 %v1416_v5, %v1404_v7 }
  0xbe   : > { %1763 = vmatmul.mubr.msk.bf16.vlgmr.msra.gmra.mrb[24].mxu1 %vm318_vm3, %v1692_v46  ;;  %v1440_v8 = vrot.slane %v1439_v1, 1 }
  0xbf   : > { %1767 = vmatpush3.bf16.msra.mxu1 %v1170_v50  ;;  %1768 = vmatprep.mubr.msk.bf16.mxu1 %vm1858_vm0, %v1857_v3 }
  0xc0   : > { %1772 = vmatprep.subr.bf16.mxu1 %v1857_v3  ;;  %v1442_v12 = vsel %vm782_vm6, %v1439_v1, %v1440_v8 }
  0xc1   : > { %1694 = vmatmul.mubr.msk.bf16.vlgmr.msra.gmra.mrb[24].mxu0 %vm318_vm3, %v1692_v46  ;;  %v1465_v11 = vpop.permute.xlu1 %1464 }
  0xc2   : > { %1173 = vmatpush1.bf16.msra.mxu0 %v1164_v53  ;;  %1204 = vmatprep.mubr.bf16.mxu0 %v1859_v6  ;;  %v1466_v17 = vrot.slane %v1465_v11, 1 }
  0xc3   : > { %1701 = vmatprep.subr.msk.bf16.mxu0 %vm322_vm1, %v1284_v54 }
  0xc4   : > { %v1468_v21 = vsel %vm1032_vm8, %v1465_v11, %v1466_v17 }
  0xc5   : > { %v1491_v19 = vpop.permute.xlu1 %1490 }
  0xc6   : > { %1769 = vmatmul.mubr.msk.bf16.vlgmr.msra.gmra.mrb[28].mxu1 %vm318_vm3, %v1696_v55  ;;  %v1492_v23 = vrot.slane %v1491_v19, 1 }
  0xc7   : > { %1773 = vmatpush3.bf16.msra.mxu1 %v1295_v57  ;;  %1774 = vmatprep.mubr.msk.bf16.mxu1 %vm1858_vm0, %v1857_v3 }
  0xc8   : > { %v1494_v27 = vsel %vm1282_vm10, %v1491_v19, %v1492_v23 }
  0xc9   : > { %1698 = vmatmul.mubr.msk.bf16.vlgmr.msra.gmra.mrb[28].mxu0 %vm318_vm3, %v1696_v55  ;;  %v1420_v26 = vpop.permute.xlu1 %1419 }
  0xca   : > { %1298 = vmatpush1.bf16.msra.mxu0 %v1289_v58  ;;  %1329 = vmatprep.mubr.bf16.mxu0 %v1859_v6  ;;  %v1426_v6 = vpop.permute.xlu0 %1425  ;;  %v1421_v33 = vrot.slane %v1420_v26, 1 }
  0xcb   : > { %v1427_v9 = vrot.slane %v1426_v6, 1 }
  0xcc   : > { %v1422_v36 = vsel %vm532_vm4, %v1420_v26, %v1421_v33 }
  0xcd   : > { %v1429_v13 = vsel %vm657_vm5, %v1426_v6, %v1427_v9  ;;  %v1446_v34 = vpop.permute.xlu1 %1445 }
  0xce   : > { %1775 = vmatmul.mubr.msk.bf16.vlgmr.msra.gmra.mrb[32].mxu1 %vm318_vm3, %v1700_v59  ;;  %v1431_v14 = vadd.f32 %v1429_v13, %v1418_v10  ;;  %v1452_v15 = vpop.permute.xlu0 %1451  ;;  %v1447_v39 = vrot.slane %v1446_v34, 1 }
  0xcf   : > { %v1453_v16 = vrot.slane %v1452_v15, 1 }
  0xd0   : > { %v1444_v18 = vadd.f32 %v1442_v12, %v1431_v14  ;;  %v1448_v43 = vsel %vm782_vm6, %v1446_v34, %v1447_v39 }
  0xd1   : > { %1702 = vmatmul.mubr.msk.bf16.vlgmr.msra.gmra.mrb[32].mxu0 %vm318_vm3, %v1700_v59  ;;  %v1455_v20 = vsel %vm907_vm7, %v1452_v15, %v1453_v16  ;;  %v1472_v42 = vpop.permute.xlu1 %1471 }
  0xd2   : > { %v1457_v49 = vadd.f32 %v1455_v20, %v1444_v18  ;;  %v1478_v22 = vpop.permute.xlu0 %1477  ;;  %v1473_v50 = vrot.slane %v1472_v42, 1 }
  0xd3   : > { %v1479_v24 = vrot.slane %v1478_v22, 1 }
  0xd4   : > { %v1470_v25 = vadd.f32 %v1468_v21, %v1457_v49  ;;  %v1474_v53 = vsel %vm1032_vm8, %v1472_v42, %v1473_v50 }
  0xd5   : > { %v1481_v28 = vsel %vm1157_vm9, %v1478_v22, %v1479_v24 }
  0xd6   : > { %v1483_v29 = vadd.f32 %v1481_v28, %v1470_v25  ;;  %v1407_v30 = vpop.permute.xlu0 %1406 }
  0xd7   : > { %v1408_v31 = vrot.slane %v1407_v30, 1 }
  0xd8   : > { %v2167_v32 = vadd.f32 %v1494_v27, %v1483_v29 }
  0xd9   : > { %v1409_v35 = vsel %vm315_vm2, %v1407_v30, %v1408_v31 }
  0xda   : > { %v1411_v37 = vmax.f32 %v1997_v48, %v1409_v35  ;;  %v1433_v38 = vpop.permute.xlu0 %1432  ;;  %v1485_v48 = vpop.permute.xlu1 %1484 }
  0xdb   : > { %v1434_v40 = vrot.slane %v1433_v38, 1  ;;  %v1486_v55 = vrot.slane %v1485_v48, 1 }
  0xdc   : > { %v1424_v41 = vmax.f32 %v1411_v37, %v1422_v36 }
  0xdd   : > { %v1435_v44 = vsel %vm657_vm5, %v1433_v38, %v1434_v40  ;;  %v1487_v58 = vsel %vm1157_vm9, %v1485_v48, %v1486_v55 }
  0xde   : > { %v1437_v45 = vmax.f32 %v1424_v41, %v1435_v44  ;;  %v1459_v46 = vpop.permute.xlu0 %1458  ;;  %v1498_v57 = vpop.permute.xlu1 %1497 }
  0xdf   : > { %v1460_v47 = vrot.slane %v1459_v46, 1  ;;  %v1499_v59 = vrot.slane %v1498_v57, 1 }
  0xe0   : > { %v1450_v51 = vmax.f32 %v1437_v45, %v1448_v43 }
  0xe1   : > { %v1461_v52 = vsel %vm907_vm7, %v1459_v46, %v1460_v47  ;;  %v1500_v61 = vsel %vm1282_vm10, %v1498_v57, %v1499_v59 }
  0xe2   : > { %v1463_v54 = vmax.f32 %v1450_v51, %v1461_v52 }
  0xe4   : > { %v1476_v56 = vmax.f32 %v1463_v54, %v1474_v53 }
  0xe6   : > { %v1489_v60 = vmax.f32 %v1476_v56, %v1487_v58 }
  0xe8   : > { %v1502_v3 = vmax.f32 %v1489_v60, %v1500_v61 }
  0xea   : > { %1546 = vst.msk [vmem:[%s278_s15] sm:$0x7] %vm1544_vm12, %v1502_v3 }
 0x161   : > { %v407_v62 = vpop.f32.mrb[0].mxu1 }
 0x162   : > { %v1728_v63 = vpop.f32.mrb[1].mxu1 }
 0x163   : > { %v410_v1 = vpop.f32.mrb[2].mxu1  ;;  %v1503_v63 = vmul.f32 4.0, %v2167_v32 }
 0x164   : > { %v366_v2 = vpop.f32.mrb[0].mxu0  ;;  %v1729_v5 = vpop.f32.mrb[3].mxu1 }
 0x165   : > { %v368_v7 = vpop.f32.mrb[1].mxu0 }
 0x166   : > { %v370_v6 = vpop.f32.mrb[2].mxu0 }
 0x167   : > { %v371_v8 = vpop.f32.mrb[3].mxu0 }
 0x168   : > { %v1511_v8 = vsub.s32 0, %v1920_v4 }
 0x169   : > { %v500_v9 = vpop.f32.mrb[4].mxu1 }
 0x16a   : > { %v501_v10 = vadd.f32 %v500_v9, %v407_v62  ;;  %v1734_v11 = vpop.f32.mrb[5].mxu1  ;;  %v1504_v9 = vmax.f32 %v1503_v63, 1e-05 }
 0x16b   : > { %v503_v12 = vpop.f32.mrb[6].mxu1 }
 0x16c   : > { %v459_v13 = vpop.f32.mrb[4].mxu0  ;;  %v1735_v14 = vpop.f32.mrb[7].mxu1  ;;  %v1515_v12 = vsub.s32 1, %v1920_v4 }
 0x16d   : > { %v460_v15 = vadd.f32 %v459_v13, %v366_v2  ;;  %v461_v16 = vpop.f32.mrb[5].mxu0 }
 0x16e   : > { %v462_v17 = vadd.f32 %v461_v16, %v368_v7  ;;  %v463_v18 = vpop.f32.mrb[6].mxu0 }
 0x16f   : > { %v464_v0 = vpop.f32.mrb[7].mxu0  ;;  %v1516_v18 = vrot.slane %v1504_v9, %v1515_v12 }
 0x171   : > { %v622_v19 = vpop.f32.mrb[8].mxu1 }
 0x172   : > { %v630_v20 = vadd.f32 %v622_v19, %v501_v10  ;;  %v1740_v21 = vpop.f32.mrb[9].mxu1 }
 0x173   : > { %v625_v49 = vpop.f32.mrb[10].mxu1 }
 0x174   : > { %v581_v22 = vpop.f32.mrb[8].mxu0  ;;  %v1741_v23 = vpop.f32.mrb[11].mxu1 }
 0x175   : > { %v628_v24 = vadd.f32 %v581_v22, %v460_v15  ;;  %v583_v25 = vpop.f32.mrb[9].mxu0 }
 0x176   : > { %v629_v26 = vadd.f32 %v583_v25, %v462_v17  ;;  %v585_v27 = vpop.f32.mrb[10].mxu0  ;;  %v1512_v17 = vrot.slane %v1504_v9, %v1511_v8 }
 0x177   : > { %v586_v28 = vpop.f32.mrb[11].mxu0 }
 0x178   : > { %1826 = vrcp.f32 %v1512_v17 }
 0x179   : > { %v747_v29 = vpop.f32.mrb[12].mxu1  ;;  %1828 = vrcp.f32 %v1516_v18 }
 0x17a   : > { %v755_v30 = vadd.f32 %v747_v29, %v630_v20  ;;  %v1746_v31 = vpop.f32.mrb[13].mxu1  ;;  %v1519_v20 = vsub.s32 2, %v1920_v4 }
 0x17b   : > { %v750_v33 = vpop.f32.mrb[14].mxu1 }
 0x17c   : > { %v706_v34 = vpop.f32.mrb[12].mxu0  ;;  %v1747_v35 = vpop.f32.mrb[15].mxu1  ;;  %v1520_v27 = vrot.slane %v1504_v9, %v1519_v20 }
 0x17d   : > { %v753_v36 = vadd.f32 %v706_v34, %v628_v24  ;;  %v708_v37 = vpop.f32.mrb[13].mxu0 }
 0x17e   : > { %v754_v38 = vadd.f32 %v708_v37, %v629_v26  ;;  %v710_v39 = vpop.f32.mrb[14].mxu0  ;;  %1830 = vrcp.f32 %v1520_v27 }
 0x17f   : > { %v711_v40 = vpop.f32.mrb[15].mxu0 }
 0x181   : > { %v872_v41 = vpop.f32.mrb[16].mxu1 }
 0x182   : > { %v880_v42 = vadd.f32 %v872_v41, %v755_v30  ;;  %v1752_v43 = vpop.f32.mrb[17].mxu1  ;;  %v1383_v30 = vld [vmem:[#allocation2 + $0x10] sm:$0xff]  ;;  %v1827_v39 = vpop.eup %1826 }
 0x183   : > { %v875_v44 = vpop.f32.mrb[18].mxu1 }
 0x184   : > { %v831_v45 = vpop.f32.mrb[16].mxu0  ;;  %v1753_v46 = vpop.f32.mrb[19].mxu1 }
 0x185   : > { %v878_v47 = vadd.f32 %v831_v45, %v753_v36  ;;  %v833_v50 = vpop.f32.mrb[17].mxu0  ;;  %v1534_v44 = vpop.permute.xlu0 %1533 }
 0x186   : > { %v879_v51 = vadd.f32 %v833_v50, %v754_v38  ;;  %v835_v48 = vpop.f32.mrb[18].mxu0 }
 0x187   : > { %v836_v52 = vpop.f32.mrb[19].mxu0 }
 0x189   : > { %v997_v53 = vpop.f32.mrb[20].mxu1 }
 0x18a   : > { %v1005_v54 = vadd.f32 %v997_v53, %v880_v42  ;;  %v1758_v55 = vpop.f32.mrb[21].mxu1  ;;  %v1829_v42 = vpop.eup %1828 }
 0x18b   : > { %v1000_v56 = vpop.f32.mrb[22].mxu1 }
 0x18c   : > { %v956_v57 = vpop.f32.mrb[20].mxu0  ;;  %v1759_v58 = vpop.f32.mrb[23].mxu1 }
 0x18d   : > { %v1003_v59 = vadd.f32 %v956_v57, %v878_v47  ;;  %v958_v60 = vpop.f32.mrb[21].mxu0 }
 0x18e   : > { %v1004_v61 = vadd.f32 %v958_v60, %v879_v51  ;;  %v960_v3 = vpop.f32.mrb[22].mxu0  ;;  %v1831_v51 = vpop.eup %1830 }
 0x18f   : > { %v961_v62 = vpop.f32.mrb[23].mxu0 }
 0x191   : > { %v1122_v1 = vpop.f32.mrb[24].mxu1 }
 0x192   : > { %v1130_v2 = vadd.f32 %v1122_v1, %v1005_v54  ;;  %v1764_v5 = vpop.f32.mrb[25].mxu1 }
 0x193   : > { %v1125_v7 = vpop.f32.mrb[26].mxu1 }
 0x194   : > { %v1081_v6 = vpop.f32.mrb[24].mxu0  ;;  %v1765_v10 = vpop.f32.mrb[27].mxu1 }
 0x195   : > { %v1128_v11 = vadd.f32 %v1081_v6, %v1003_v59  ;;  %v1083_v13 = vpop.f32.mrb[25].mxu0 }
 0x196   : > { %v1129_v14 = vadd.f32 %v1083_v13, %v1004_v61  ;;  %v1085_v15 = vpop.f32.mrb[26].mxu0 }
 0x197   : > { %v1086_v16 = vpop.f32.mrb[27].mxu0 }
 0x199   : > { %v1247_v0 = vpop.f32.mrb[28].mxu1 }
 0x19a   : > { %v1255_v32 = vadd.f32 %v1247_v0, %v1130_v2  ;;  %v1770_v19 = vpop.f32.mrb[29].mxu1 }
 0x19b   : > { %v1250_v21 = vpop.f32.mrb[30].mxu1 }
 0x19c   : > { %v1206_v49 = vpop.f32.mrb[28].mxu0  ;;  %v1771_v22 = vpop.f32.mrb[31].mxu1 }
 0x19d   : > { %v1253_v23 = vadd.f32 %v1206_v49, %v1128_v11  ;;  %v1208_v24 = vpop.f32.mrb[29].mxu0 }
 0x19e   : > { %v1254_v25 = vadd.f32 %v1208_v24, %v1129_v14  ;;  %v1210_v26 = vpop.f32.mrb[30].mxu0 }
 0x19f   : > { %v1211_v28 = vpop.f32.mrb[31].mxu0 }
 0x1a1   : > { %v1372_v29 = vpop.f32.mrb[32].mxu1 }
 0x1a2   : > { %v1380_v31 = vadd.f32 %v1372_v29, %v1255_v32  ;;  %v1776_v33 = vpop.f32.mrb[33].mxu1 }
 0x1a3   : > { %v1375_v34 = vpop.f32.mrb[34].mxu1 }
 0x1a4   : > { %v1386_v35 = vadd.f32 %v1383_v30, %v1380_v31  ;;  %v1331_v4 = vpop.f32.mrb[32].mxu0  ;;  %v1777_v36 = vpop.f32.mrb[35].mxu1 }
 0x1a5   : > { %v1378_v37 = vadd.f32 %v1331_v4, %v1253_v23  ;;  %v1333_v38 = vpop.f32.mrb[33].mxu0 }
 0x1a6   : > { %1390 = vst.msk [vmem:[#allocation2 + $0x10] sm:$0xff] %vm286_vm11, %v1386_v35  ;;  %v1379_v40 = vadd.f32 %v1333_v38, %v1254_v25  ;;  %v1335_v41 = vpop.f32.mrb[34].mxu0 }
 0x1a7   : > { %v1336_v43 = vpop.f32.mrb[35].mxu0  ;;  %v1525_v45 = vmul.f32 %v1827_v39, %v1378_v37 }
 0x1a8   : > { %v1527_v46 = vmul.f32 %v1829_v42, %v1379_v40 }
 0x1a9   : > { %v1536_v47 = vadd.f32 %v1534_v44, %v1525_v45 }
 0x1aa   : > { %v1537_v50 = vadd.f32 %v1534_v44, %v1527_v46 }
 0x1ab   : > { %1539 = vst [vmem:[%s274_s22] sm:$0xff] %v1536_v47 }
 0x1ac   : > { %1540 = vst [vmem:[%s274_s22 + $0x8] sm:$0xff] %v1537_v50 }
 0x1ad   : > { %v1507_v48 = vld [vmem:[#allocation2 + $0x10] sm:$0xff] }
 0x1ae   : > { %v1529_v52 = vmul.f32 %v1831_v51, %v1507_v48 }
 0x1b0   : > { %v1538_v53 = vadd.f32 %v1534_v44, %v1529_v52 }
 0x1b2   : > { %1541 = vst.msk [vmem:[%s274_s22 + $0x10] sm:$0xff] %vm286_vm11, %v1538_v53 }
 0x1b3 PF: > { %s16_s20 = sadd.s32 1, %s1854_s20   ;;  %s2211_s18 = smov %s1850_s19 }
 0x1b4   : > { %p13_p5 = scmp.ge.s32.totalorder %s16_s20, 4   ;;  %s2212_s19 = smov %s2214_s21 }
 0x1b6   :  { %15 = sbr.rel (!%p13_p5) target bundleno = 2 (0x2), region = 97 }

</bundles_post_ra>
